<compile_context>
chip_gen: v7x
topology: tpu7x:2x2x1
jax: 0.10.0
libtpu: 0.0.40
codegen_flags: <defaults>
</compile_context>

<pallas_src>
import jax
import jax.numpy as jnp
from jax import lax
from jax.experimental import pallas as pl
from jax.experimental.pallas import tpu as pltpu


_BIG = 1e30  # sentinel row-norm for zero-padded rows -> exp(-BIG/d^2) == 0


def _round_up(x, m):
    return (x + m - 1) // m * m


def _device_kind():
    try:
        return jax.devices()[0].device_kind.lower()
    except Exception:
        return ""


_KIND = _device_kind()
_IS_V7 = ("v7" in _KIND) or ("7x" in _KIND)
_IS_OLD_GEN = any(t in _KIND for t in ("v2", "v3", "v4", "v5"))
# bf16 transcendentals only pay off on v6e/v7x (v5e has no bf16 EUP).
_BF16_EXP = not _IS_OLD_GEN
# v7x: 64 MiB VMEM + 2 TCs -> smaller row tiles; v5e: 16 MiB scoped default;
# v6e: large tiles get closer to the HBM roofline.
_TM_MAX = 256 if _IS_V7 else (512 if "v5" in _KIND else 1024)


def _vmem_limit(need_bytes):
    # stay below v7x physical 64 MiB, never below the most generous default
    return int(min(60 * 1024 * 1024, max(32 * 1024 * 1024, 2 * need_bytes)))


# ---------------------------------------------------------------------------
# Pallas kernels
# ---------------------------------------------------------------------------

def _fused_vae_kernel(x_ref, ew_ref, eb_ref, dw_ref, db_ref, m_ref,
                      lat_ref, rec_ref):
    # encoder: (tm, H)bf16 @ (H, L)bf16 -> f32 acc, f32 bias, per-row mask
    lat = jnp.dot(x_ref[...], ew_ref[...], preferred_element_type=jnp.float32)
    lat = (lat + eb_ref[...]) * m_ref[...]
    lat_ref[...] = lat
    # decoder: latent never leaves VMEM; recast to bf16 only for the MXU.
    # TODO(synk): optionally skip the lat_ref HBM writeback when the caller
    # does not consume the latent (training paths using only rec + reg_loss).
    rec = jnp.dot(lat.astype(jnp.bfloat16), dw_ref[...],
                  preferred_element_type=jnp.float32)
    rec_ref[...] = rec + db_ref[...]


def _linear_kernel(x_ref, w_ref, b_ref, o_ref):
    # decoder-only path: (tm, Din)bf16 @ (Din, Dout)bf16 + (1, Dout)f32
    y = jnp.dot(x_ref[...], w_ref[...], preferred_element_type=jnp.float32)
    o_ref[...] = y + b_ref[...]


def _make_mmd_kernel(tn, d, nb, use_bf16_exp, inv_n2):
    # mmd = mean(k(x,x)) + mean(k(y,y)) - 2*mean(k(x,y)),
    # k(a,b)_ij = exp(-||a_i - b_j||^2 / d^2)
    inv = 1.0 / float(d * d)

    def ksum(a, b, aa, bb):
        # pairwise squared distances via the Gram trick; row norms are
        # precomputed in the wrapper (aa: (tn,1), bb: (1,tn) lane-dense).
        ab = lax.dot_general(a, b, (((1,), (1,)), ((), ())),
                             preferred_element_type=jnp.float32)
        sq = jnp.maximum(aa + bb - 2.0 * ab, 0.0) * inv
        if use_bf16_exp:
            k = jnp.exp((-sq).astype(jnp.bfloat16))
        else:
            k = jnp.exp(-sq)
        # sublane-only reduction; cross-lane collapse deferred to finalize.
        return jnp.sum(k, axis=0, keepdims=True, dtype=jnp.float32)  # (1, tn)

    def kernel(xi_ref, yi_ref, xj_ref, yj_ref,
               sxi_ref, syi_ref, sxj_ref, syj_ref, o_ref, acc_ref):
        gi = pl.program_id(0)
        gj = pl.program_id(1)

        @pl.when(gj == 0)
        def _():
            acc_ref[...] = jnp.zeros_like(acc_ref)

        # cross term k(x,y): needed for every (i, j) block.
        acc_ref[...] += -2.0 * ksum(xi_ref[...], yj_ref[...],
                                    sxi_ref[...], syj_ref[...])

        # symmetric terms k(x,x), k(y,y): upper triangle only; block (j,i)
        # is the transpose of block (i,j) so off-diagonal blocks count twice.
        @pl.when(gj >= gi)
        def _():
            w = jnp.where(gj == gi, 1.0, 2.0).astype(jnp.float32)
            acc_ref[...] += w * ksum(xi_ref[...], xj_ref[...],
                                     sxi_ref[...], sxj_ref[...])
            acc_ref[...] += w * ksum(yi_ref[...], yj_ref[...],
                                     syi_ref[...], syj_ref[...])

        @pl.when(gj == nb - 1)
        def _():
            a = acc_ref[...]                      # (1, tn)
            r = a[:, 0:128]
            for c in range(1, tn // 128):         # tn is a multiple of 128
                r = r + a[:, c * 128:(c + 1) * 128]
            o_ref[...] = jnp.reshape(r * inv_n2, (1, 1, 128))

    return kernel


# ---------------------------------------------------------------------------
# pallas_call wrappers
# ---------------------------------------------------------------------------

def pallas_vae_encode_decode(x2d, enc_w, enc_b, dec_w, dec_b, mask2d,
                             tm_max=None):
    """Fused encoder + mask + decoder, tiled over rows M = B*S."""
    m, h = x2d.shape
    l = enc_w.shape[1]
    tm_max = _TM_MAX if tm_max is None else tm_max

    m_pad = _round_up(m, 8)
    if _IS_V7:
        # guarantee >= 2 row blocks so the "parallel" axis uses both TCs
        tm = min(tm_max, max(8, _round_up((m_pad + 1) // 2, 8)))
    else:
        tm = min(tm_max, m_pad)
    m_pad = _round_up(m_pad, tm)
    if m_pad != m:
        x2d = jnp.pad(x2d, ((0, m_pad - m), (0, 0)))
        mask2d = jnp.pad(mask2d, ((0, m_pad - m), (0, 0)))
    nb = m_pad // tm

    xb = x2d.astype(jnp.bfloat16)
    ewb = enc_w.astype(jnp.bfloat16)
    dwb = dec_w.astype(jnp.bfloat16)
    ebf = enc_b.astype(jnp.float32)
    dbf = dec_b.astype(jnp.float32)
    maskf = mask2d.astype(jnp.float32)

    # double-buffered activation/output tiles + 2x pinned weights
    need = (2 * (tm * h * 2 + tm * 4 + tm * l * 4 + tm * h * 4)
            + 2 * (h * l * 2 + l * 4 + l * h * 2 + h * 4))
    cost = pl.CostEstimate(
        flops=4 * m_pad * h * l,
        transcendentals=0,
        bytes_accessed=(2 * m_pad * h + 4 * m_pad * h + 4 * m_pad * l
                        + 4 * m_pad + 4 * h * l + 4 * (h + l)),
    )

    lat, rec = pl.pallas_call(
        _fused_vae_kernel,
        out_shape=(jax.ShapeDtypeStruct((m_pad, l), jnp.float32),
                   jax.ShapeDtypeStruct((m_pad, h), jnp.float32)),
        grid=(nb,),
        in_specs=[
            pl.BlockSpec((tm, h), lambda i: (i, 0)),   # activations (tiled)
            pl.BlockSpec((h, l), lambda i: (0, 0)),    # enc_w (pinned)
            pl.BlockSpec((1, l), lambda i: (0, 0)),    # enc_b (pinned)
            pl.BlockSpec((l, h), lambda i: (0, 0)),    # dec_w (pinned)
            pl.BlockSpec((1, h), lambda i: (0, 0)),    # dec_b (pinned)
            pl.BlockSpec((tm, 1), lambda i: (i, 0)),   # mask (tiled)
        ],
        out_specs=(pl.BlockSpec((tm, l), lambda i: (i, 0)),
                   pl.BlockSpec((tm, h), lambda i: (i, 0))),
        compiler_params=pltpu.CompilerParams(
            dimension_semantics=("parallel",),
            vmem_limit_bytes=_vmem_limit(need)),
        cost_estimate=cost,
    )(xb, ewb, ebf, dwb, dbf, maskf)
    return lat[:m], rec[:m]


def pallas_linear(x2d, w, b, tm_max=None):
    """Row-tiled Linear for the decoder-only (latent-given) path."""
    m, din = x2d.shape
    dout = w.shape[1]
    tm_max = _TM_MAX if tm_max is None else tm_max

    m_pad = _round_up(m, 8)
    if _IS_V7:
        tm = min(tm_max, max(8, _round_up((m_pad + 1) // 2, 8)))
    else:
        tm = min(tm_max, m_pad)
    m_pad = _round_up(m_pad, tm)
    if m_pad != m:
        x2d = jnp.pad(x2d, ((0, m_pad - m), (0, 0)))
    nb = m_pad // tm

    xb = x2d.astype(jnp.bfloat16)
    wb = w.astype(jnp.bfloat16)
    bf = b.astype(jnp.float32)

    need = 2 * (tm * din * 2 + tm * dout * 4) + 2 * (din * dout * 2 + dout * 4)
    cost = pl.CostEstimate(
        flops=2 * m_pad * din * dout,
        transcendentals=0,
        bytes_accessed=2 * m_pad * din + 2 * din * dout + 4 * dout
        + 4 * m_pad * dout,
    )

    out = pl.pallas_call(
        _linear_kernel,
        out_shape=jax.ShapeDtypeStruct((m_pad, dout), jnp.float32),
        grid=(nb,),
        in_specs=[
            pl.BlockSpec((tm, din), lambda i: (i, 0)),
            pl.BlockSpec((din, dout), lambda i: (0, 0)),
            pl.BlockSpec((1, dout), lambda i: (0, 0)),
        ],
        out_specs=pl.BlockSpec((tm, dout), lambda i: (i, 0)),
        compiler_params=pltpu.CompilerParams(
            dimension_semantics=("parallel",),
            vmem_limit_bytes=_vmem_limit(need)),
        cost_estimate=cost,
    )(xb, wb, bf)
    return out[:m]


def pallas_mmd(true_samples, latent2d, tn_max=256):
    """Blocked MMD: 2-D grid over (i_block, j_block), per-i partial sums."""
    n, d = latent2d.shape
    tn = min(tn_max, _round_up(n, 128))       # tn always a multiple of 128
    n_pad = _round_up(n, tn)
    nb = n_pad // tn

    # Row sums-of-squares precomputed once (reused by every grid step).
    xs = jnp.sum(true_samples * true_samples, axis=1, keepdims=True)
    ys = jnp.sum(latent2d * latent2d, axis=1, keepdims=True)
    if n_pad != n:
        pad = ((0, n_pad - n), (0, 0))
        true_samples = jnp.pad(true_samples, pad)
        latent2d = jnp.pad(latent2d, pad)
        # BIG sentinel norms force exp(-BIG/d^2) == 0 for padded rows/cols:
        # no in-kernel masking, interior blocks run completely mask-free.
        xs = jnp.pad(xs, pad, constant_values=_BIG)
        ys = jnp.pad(ys, pad, constant_values=_BIG)
    xs_j = xs.T                                # (1, n_pad) lane-dense layout
    ys_j = ys.T

    kernel = _make_mmd_kernel(tn, d, nb, _BF16_EXP, 1.0 / float(n) ** 2)

    need = (2 * (4 * tn * d * 4 + 2 * tn * 4 + 2 * tn * 4 + 512)
            + 2 * tn * tn * 4 + tn * 4)
    cost = pl.CostEstimate(
        flops=4 * n_pad * n_pad * d,
        transcendentals=2 * n_pad * n_pad,
        bytes_accessed=4 * (4 * n_pad * d * nb + 4 * n_pad * nb + nb * 128),
    )

    out = pl.pallas_call(
        kernel,
        out_shape=jax.ShapeDtypeStruct((nb, 1, 128), jnp.float32),
        grid=(nb, nb),
        in_specs=[
            pl.BlockSpec((tn, d), lambda i, j: (i, 0)),   # x_i
            pl.BlockSpec((tn, d), lambda i, j: (i, 0)),   # y_i
            pl.BlockSpec((tn, d), lambda i, j: (j, 0)),   # x_j
            pl.BlockSpec((tn, d), lambda i, j: (j, 0)),   # y_j
            pl.BlockSpec((tn, 1), lambda i, j: (i, 0)),   # ||x_i||^2
            pl.BlockSpec((tn, 1), lambda i, j: (i, 0)),   # ||y_i||^2
            pl.BlockSpec((1, tn), lambda i, j: (0, j)),   # ||x_j||^2 (row)
            pl.BlockSpec((1, tn), lambda i, j: (0, j)),   # ||y_j||^2 (row)
        ],
        out_specs=pl.BlockSpec((1, 1, 128), lambda i, j: (i, 0, 0)),
        scratch_shapes=[pltpu.VMEM((1, tn), jnp.float32)],
        compiler_params=pltpu.CompilerParams(
            dimension_semantics=("parallel", "arbitrary"),
            vmem_limit_bytes=_vmem_limit(need)),
        cost_estimate=cost,
    )(true_samples, latent2d, true_samples, latent2d, xs, ys, xs_j, ys_j)
    return jnp.sum(out)


# ---------------------------------------------------------------------------
# VAE (mirrors the PyTorch module's forward semantics)
# ---------------------------------------------------------------------------

class PallasVAE:
    def __init__(self, hidden_dim, latent_dim, key, use_reg_loss=True):
        k1, k2, k3, k4 = jax.random.split(key, 4)
        s_e = 1.0 / float(hidden_dim) ** 0.5
        s_d = 1.0 / float(latent_dim) ** 0.5
        # deterministic nn.Linear-style init (uniform +- 1/sqrt(fan_in))
        self.enc_w = jax.random.uniform(k1, (hidden_dim, latent_dim), jnp.float32, -s_e, s_e)
        self.enc_b = jax.random.uniform(k2, (1, latent_dim), jnp.float32, -s_e, s_e)
        self.dec_w = jax.random.uniform(k3, (latent_dim, hidden_dim), jnp.float32, -s_d, s_d)
        self.dec_b = jax.random.uniform(k4, (1, hidden_dim), jnp.float32, -s_d, s_d)
        self.use_reg_loss = use_reg_loss

    def encode_decode(self, encoding, attention_mask=None):
        b, s, h = encoding.shape
        x = encoding.reshape(b * s, h)
        if attention_mask is None:
            mask = jnp.ones((b * s, 1), jnp.float32)
        else:
            mask = attention_mask.reshape(b * s, 1).astype(jnp.float32)
        lat, rec = pallas_vae_encode_decode(
            x, self.enc_w, self.enc_b, self.dec_w, self.dec_b, mask)
        return lat.reshape(b, s, -1), rec.reshape(b, s, -1)

    def decoder(self, latent):
        b, s, l = latent.shape
        y = pallas_linear(latent.reshape(b * s, l), self.dec_w, self.dec_b)
        return y.reshape(b, s, -1)

    def __call__(self, input_encoding=None, latent=None, skip_reg_loss=False,
                 attention_mask=None, noise_key=None):
        if input_encoding is None and latent is None:
            raise ValueError("Both `input_encoding` and `latent` sent to VAE are None.")
        use_reg_loss = self.use_reg_loss and latent is None and (skip_reg_loss is False)
        if latent is None:
            latent, recon_encoding = self.encode_decode(
                input_encoding, attention_mask=attention_mask)
        else:
            recon_encoding = self.decoder(latent)
        if use_reg_loss:
            batch_size, n_latents_per_batch, latent_code_dim = latent.shape
            flat = latent.reshape(-1, latent_code_dim)
            # torch.randn(latent.size()) -> deterministic jax.random draw
            true_samples = jax.random.normal(noise_key, flat.shape, jnp.float32)
            reg_loss = pallas_mmd(true_samples, flat) / batch_size * n_latents_per_batch
        else:
            reg_loss = jnp.zeros((), jnp.float32)
        # BaseVaeOutput(latent=..., reconstructed_encoding=..., reg_loss=...)
        return {"latent": latent,
                "reconstructed_encoding": recon_encoding,
                "reg_loss": reg_loss}


# ---------------------------------------------------------------------------
# Pure-JAX reference (same math as the PyTorch module) for a sanity check
# ---------------------------------------------------------------------------

def _ref_forward(vae, x, mask, noise_key):
    b, s, h = x.shape
    flat = x.reshape(-1, h)
    lat = (flat @ vae.enc_w + vae.enc_b) * mask.reshape(-1, 1)
    l = lat.shape[-1]
    rec = (lat @ vae.dec_w + vae.dec_b).reshape(b, s, h)
    ts = jax.random.normal(noise_key, lat.shape, jnp.float32)

    def kern(a, bb):
        d = jnp.mean((a[:, None, :] - bb[None, :, :]) ** 2, axis=2) / l
        return jnp.exp(-d)

    mmd = jnp.mean(kern(ts, ts)) + jnp.mean(kern(lat, lat)) - 2.0 * jnp.mean(kern(ts, lat))
    return lat.reshape(b, s, l), rec, mmd / b * s


if __name__ == "__main__":
    key = jax.random.PRNGKey(0)
    kp, kx, kn, kx2, kn2 = jax.random.split(key, 5)

    B, S, H, L = 2, 8, 32, 16          # batch, seq (n_latents_per_batch), hidden, latent dim
    vae = PallasVAE(H, L, kp)

    # --- case 1: full mask, tile-aligned shapes -----------------------------
    input_encoding = jax.random.normal(kx, (B, S, H), jnp.float32)
    attention_mask = jnp.ones((B, S), jnp.float32)

    out = vae(input_encoding=input_encoding, attention_mask=attention_mask, noise_key=kn)
    jax.block_until_ready(out)

    ref_lat, ref_rec, ref_reg = _ref_forward(vae, input_encoding, attention_mask, kn)
    assert jnp.allclose(out["latent"], ref_lat, rtol=5e-2, atol=5e-2)
    assert jnp.allclose(out["reconstructed_encoding"], ref_rec, rtol=5e-2, atol=5e-2)
    assert jnp.allclose(out["reg_loss"], ref_reg, rtol=5e-2, atol=5e-2)

    # --- case 2: ragged rows (padding path) + partial mask -------------------
    S2 = 5
    input_encoding2 = jax.random.normal(kx2, (B, S2, H), jnp.float32)
    attention_mask2 = jnp.ones((B, S2), jnp.float32).at[:, -1].set(0.0)

    out2 = vae(input_encoding=input_encoding2, attention_mask=attention_mask2, noise_key=kn2)
    jax.block_until_ready(out2)

    ref_lat2, ref_rec2, ref_reg2 = _ref_forward(vae, input_encoding2, attention_mask2, kn2)
    assert jnp.allclose(out2["latent"], ref_lat2, rtol=5e-2, atol=5e-2)
    assert jnp.allclose(out2["reconstructed_encoding"], ref_rec2, rtol=5e-2, atol=5e-2)
    assert jnp.allclose(out2["reg_loss"], ref_reg2, rtol=5e-2, atol=5e-2)

    # --- case 3: latent-given path (decoder only, no reg loss) ---------------
    out3 = vae(latent=out["latent"])
    jax.block_until_ready(out3)
    assert jnp.allclose(out3["reconstructed_encoding"], ref_rec, rtol=5e-2, atol=5e-2)
    assert jnp.allclose(out3["reg_loss"], 0.0)

    print("KERNEL_OK")
</pallas_src>

<mosaic_0001>
module attributes {stable_mosaic.version = 11 : i64} {
  func.func @_fused_vae_kernel(%arg0: i32, %arg1: memref<16x32xbf16, #tpu.memory_space<vmem>>, %arg2: memref<32x16xbf16, #tpu.memory_space<vmem>>, %arg3: memref<1x16xf32, #tpu.memory_space<vmem>>, %arg4: memref<16x32xbf16, #tpu.memory_space<vmem>>, %arg5: memref<1x32xf32, #tpu.memory_space<vmem>>, %arg6: memref<16x1xf32, #tpu.memory_space<vmem>>, %arg7: memref<16x16xf32, #tpu.memory_space<vmem>>, %arg8: memref<16x32xf32, #tpu.memory_space<vmem>>) attributes {dimension_semantics = [#tpu.dimension_semantics<parallel>], iteration_bounds = array<i64: 1>, scalar_prefetch = 0 : i64, scratch_operands = 0 : i64, tpu.core_type = #tpu.core_type<tc>, window_params = [{transform_indices = @transform_0, window_bounds = array<i64: 16, 32>}, {pipeline_mode = #tpu.pipeline_mode<synchronous>, transform_indices = @transform_1, window_bounds = array<i64: 32, 16>}, {pipeline_mode = #tpu.pipeline_mode<synchronous>, transform_indices = @transform_2, window_bounds = array<i64: 1, 16>}, {pipeline_mode = #tpu.pipeline_mode<synchronous>, transform_indices = @transform_3, window_bounds = array<i64: 16, 32>}, {pipeline_mode = #tpu.pipeline_mode<synchronous>, transform_indices = @transform_4, window_bounds = array<i64: 1, 32>}, {transform_indices = @transform_5, window_bounds = array<i64: 16, 1>}, {transform_indices = @transform_6, window_bounds = array<i64: 16, 16>}, {transform_indices = @transform_7, window_bounds = array<i64: 16, 32>}]} {
    %c0 = arith.constant 0 : index
    %c0_0 = arith.constant 0 : index
    %0 = vector.load %arg1[%c0, %c0_0] : memref<16x32xbf16, #tpu.memory_space<vmem>>, vector<16x32xbf16>
    %c0_1 = arith.constant 0 : index
    %c0_2 = arith.constant 0 : index
    %1 = vector.load %arg2[%c0_1, %c0_2] : memref<32x16xbf16, #tpu.memory_space<vmem>>, vector<32x16xbf16>
    %cst = arith.constant dense<0.000000e+00> : vector<16x16xf32>
    %2 = tpu.matmul %0, %1, %cst {dimension_numbers = #tpu.dot_dimension_numbers<[1], [0], [0], [1], [0, 0, 1, 1], [], []>} : vector<16x32xbf16>, vector<32x16xbf16>, vector<16x16xf32> -> vector<16x16xf32>
    %c0_3 = arith.constant 0 : index
    %c0_4 = arith.constant 0 : index
    %3 = vector.load %arg3[%c0_3, %c0_4] : memref<1x16xf32, #tpu.memory_space<vmem>>, vector<1x16xf32>
    %4 = vector.broadcast %3 : vector<1x16xf32> to vector<16x16xf32>
    %5 = arith.addf %2, %4 : vector<16x16xf32>
    %c0_5 = arith.constant 0 : index
    %c0_6 = arith.constant 0 : index
    %6 = vector.load %arg6[%c0_5, %c0_6] : memref<16x1xf32, #tpu.memory_space<vmem>>, vector<16x1xf32>
    %7 = vector.broadcast %6 : vector<16x1xf32> to vector<16x16xf32>
    %8 = arith.mulf %5, %7 : vector<16x16xf32>
    %c0_7 = arith.constant 0 : index
    %c0_8 = arith.constant 0 : index
    %9 = vector.load %arg7[%c0_7, %c0_8] : memref<16x16xf32, #tpu.memory_space<vmem>>, vector<16x16xf32>
    tpu.vector_store %arg7[%c0_7, %c0_8], %8 {strides = array<i32>} : memref<16x16xf32, #tpu.memory_space<vmem>>, vector<16x16xf32>,
    %10 = arith.truncf %8 : vector<16x16xf32> to vector<16x16xbf16>
    %c0_9 = arith.constant 0 : index
    %c0_10 = arith.constant 0 : index
    %11 = vector.load %arg4[%c0_9, %c0_10] : memref<16x32xbf16, #tpu.memory_space<vmem>>, vector<16x32xbf16>
    %cst_11 = arith.constant dense<0.000000e+00> : vector<16x32xf32>
    %12 = tpu.matmul %10, %11, %cst_11 {dimension_numbers = #tpu.dot_dimension_numbers<[1], [0], [0], [1], [0, 0, 1, 1], [], []>} : vector<16x16xbf16>, vector<16x32xbf16>, vector<16x32xf32> -> vector<16x32xf32>
    %c0_12 = arith.constant 0 : index
    %c0_13 = arith.constant 0 : index
    %13 = vector.load %arg5[%c0_12, %c0_13] : memref<1x32xf32, #tpu.memory_space<vmem>>, vector<1x32xf32>
    %14 = vector.broadcast %13 : vector<1x32xf32> to vector<16x32xf32>
    %15 = arith.addf %12, %14 : vector<16x32xf32>
    %c0_14 = arith.constant 0 : index
    %c0_15 = arith.constant 0 : index
    %16 = vector.load %arg8[%c0_14, %c0_15] : memref<16x32xf32, #tpu.memory_space<vmem>>, vector<16x32xf32>
    tpu.vector_store %arg8[%c0_14, %c0_15], %15 {strides = array<i32>} : memref<16x32xf32, #tpu.memory_space<vmem>>, vector<16x32xf32>,
    return
  }
  func.func @transform_0(%arg0: i32) -> (i32, i32) {
    %c0_i32 = arith.constant 0 : i32
    %c0_i32_0 = arith.constant 0 : i32
    return %arg0, %c0_i32 : i32, i32
  }
  func.func @transform_1(%arg0: i32) -> (i32, i32) {
    %c0_i32 = arith.constant 0 : i32
    %c0_i32_0 = arith.constant 0 : i32
    %c0_i32_1 = arith.constant 0 : i32
    return %c0_i32, %c0_i32_0 : i32, i32
  }
  func.func @transform_2(%arg0: i32) -> (i32, i32) {
    %c0_i32 = arith.constant 0 : i32
    %c0_i32_0 = arith.constant 0 : i32
    %c0_i32_1 = arith.constant 0 : i32
    return %c0_i32, %c0_i32_0 : i32, i32
  }
  func.func @transform_3(%arg0: i32) -> (i32, i32) {
    %c0_i32 = arith.constant 0 : i32
    %c0_i32_0 = arith.constant 0 : i32
    %c0_i32_1 = arith.constant 0 : i32
    return %c0_i32, %c0_i32_0 : i32, i32
  }
  func.func @transform_4(%arg0: i32) -> (i32, i32) {
    %c0_i32 = arith.constant 0 : i32
    %c0_i32_0 = arith.constant 0 : i32
    %c0_i32_1 = arith.constant 0 : i32
    return %c0_i32, %c0_i32_0 : i32, i32
  }
  func.func @transform_5(%arg0: i32) -> (i32, i32) {
    %c0_i32 = arith.constant 0 : i32
    %c0_i32_0 = arith.constant 0 : i32
    return %arg0, %c0_i32 : i32, i32
  }
  func.func @transform_6(%arg0: i32) -> (i32, i32) {
    %c0_i32 = arith.constant 0 : i32
    %c0_i32_0 = arith.constant 0 : i32
    return %arg0, %c0_i32 : i32, i32
  }
  func.func @transform_7(%arg0: i32) -> (i32, i32) {
    %c0_i32 = arith.constant 0 : i32
    %c0_i32_0 = arith.constant 0 : i32
    return %arg0, %c0_i32 : i32, i32
  }
}

</mosaic_0001>

<bundles_post_ra>
// kernel: tpu_custom_call.1
= control target key start
LH: loop header
LB: loop body
LE: loop exit
PB: predicated region body
PF: predicated region fallthrough
CT: control target
= control target key end

     0   :  { %13 = vsyncpa [#allocation3], 0  ;;  %v301_v1 = vmov 0.0   ;;  %vm302_vm0 = vmmov 0   ;;  %v303_v4 = vmov 0   ;;  %s405_s0 = inlined_call_operand.vmem [shape: bf16[16,32], index: 0, kind: input, shape index: {}]   ;;  %s406_s1 = inlined_call_operand.vmem [shape: bf16[32,16], index: 1, kind: input, shape index: {}]   ;;  %s407_s2 = inlined_call_operand.vmem [shape: f32[1,16], index: 2, kind: input, shape index: {}]   ;;  %s408_s3 = inlined_call_operand.vmem [shape: bf16[16,32], index: 3, kind: input, shape index: {}]   ;;  %s409_s4 = inlined_call_operand.vmem [shape: f32[1,32], index: 4, kind: input, shape index: {}]   ;;  %s410_s5 = inlined_call_operand.vmem [shape: f32[16,1], index: 5, kind: input, shape index: {}]   ;;  %s411_s6 = inlined_call_operand.hbm [shape: f32[16,16], index: 6, kind: output, shape index: {0}]   ;;  %s412_s7 = inlined_call_operand.hbm [shape: f32[16,32], index: 7, kind: output, shape index: {1}]  }
   0x1   :  { %v249_v0 = vld [vmem:[%s406_s1] sm:$0xff]   ;;  %227 = vmatprep.subr.bf16.mxu0 %v301_v1  ;;  %235 = vmatprep.subr.bf16.mxu1 %v301_v1  ;;  %v250_v2 = vld [vmem:[%s406_s1 + $0x8] sm:$0xff]  }
   0x2   :  { %228 = vmatpush3.bf16.msra.mxu0 %v249_v0  ;;  %231 = vmatprep.mubr.msk.bf16.mxu0 %vm302_vm0, %v301_v1  ;;  %v103_v3 = vld [vmem:[%s410_s5] sm:$0xff] }
   0x3   :  { %229 = vmatprep.subr.bf16.mxu0 %v301_v1  ;;  %237 = vmatprep.mubr.msk.bf16.mxu1 %vm302_vm0, %v301_v1 }
   0x4   :  { %248 = vset.pattern.permute.xlu0 %v303_v4 }
   0x5   :  { %14 = vsyncpa [#allocation5], 0  ;;  %v251_v5 = vld [vmem:[%s405_s0] sm:$0xff]   ;;  %107 = vperm.xlu0 %248, %v103_v3   ;;  %vm58_vm1 = vcmask 261120   ;;  %v104_v6 = vld [vmem:[%s410_s5 + $0x8] sm:$0xff]  ;;  %vm117_vm2 = vcmask 130048  }
   0x6   :  { %230 = vmatpush3.bf16.msra.mxu0 %v250_v2  ;;  %v252_v7 = vld [vmem:[%s408_s3] sm:$0xff]   ;;  %s304_s0 = smov [#allocation2]  }
   0x7   :  { %236 = vmatpush3.bf16.msra.mxu1 %v252_v7  ;;  %v214_v9 = vld [vmem:[%s407_s2] ss:$0 sm:$0xff]  ;;  %s187_s3 = sshll.u32 %s304_s0, 4  ;;  %s188_s3 = int_to_ptr.vmem [resolvable:$true] %s187_s3 }
   0x8   :  { %s253_s5 = scalar_lea.vmem %s188_s3, 256  ;;  %p258_p1 = scmp.lt.s32.totalorder %s188_s3, %s188_s3 }
   0x9   :  { %232 = vmatmul.mubr.msk.bf16.vlgmr.msra.gmra.mrb[0].mxu0 %vm58_vm1, %v251_v5  ;;  %112 = vperm.xlu0 %248, %v104_v6   ;;  %p254_p0 = scmp.ne.s32.totalorder %s188_s3, %s253_s5  ;;  %p259_p2 = scmp.lt.s32.totalorder %s253_s5, %s253_s5 }
   0xb   :  { %p260_p3 = por %p259_p2, %p258_p1 }
   0xd   :  { %p261_p4 = pnand %p260_p3, %p254_p0 }
  0x84   :  { %v108_v8 = vpop.permute.xlu0 %107 }
  0x88   :  { %v113_v17 = vpop.permute.xlu0 %112 }
  0xdc   :  { %v96_v10 = vpop.f32.mrb[0].mxu0 }
  0xdd   :  { %v97_v11 = vadd.f32 %v214_v9, %v96_v10  ;;  %v233_v12 = vpop.f32.mrb[1].mxu0 }
  0xde   :  { %v99_v13 = vpop.f32.mrb[2].mxu0 }
  0xdf   :  { %v115_v14 = vmul.f32 %v108_v8, %v97_v11  ;;  %v100_v15 = vadd.f32 %v214_v9, %v99_v13  ;;  %v234_v16 = vpop.f32.mrb[3].mxu0 }
  0xe1   :  { %v116_v18 = vmul.f32 %v113_v17, %v100_v15  ;;  %118 = vst.msk [vmem:[#allocation2] sm:$0xff] %vm117_vm2, %v115_v14 }
  0xe3   :  { %v120_v19 = vpack.c.bf16 %v116_v18, %v115_v14  ;;  %119 = vst.msk [vmem:[#allocation2 + $0x8] sm:$0xff] %vm117_vm2, %v116_v18 }
  0xe5   :  { %238 = vmatmul.mubr.msk.bf16.vlgmr.msra.gmra.mrb[0].mxu1 %vm117_vm2, %v120_v19 }
  0xe6   :  { %264 = shalt.err (!%p261_p4)
}
  0xe7   :  { %s265_s15 = scalar_lea.hbm %s411_s6, 256 }
  0xe8   :  { %p266_p5 = scmp.ne.s32.totalorder %s411_s6, %s265_s15  ;;  %p269_p6 = scmp.lt.u32.totalorder %s265_s15, %s411_s6 }
  0xea   :  { %p271_p7 = pnand %p269_p6, %p266_p5 }
  0xec   :  { %274 = shalt.err (!%p271_p7)
}
  0xed   :  { %s305_s20 = smov 128   ;;  %s306_s21 = smov 8   ;;  %v219_v20 = vld [vmem:[%s409_s4] ss:$0 sm:$0xff] }
  0xee   :  { %193 = dma.vmem_to_hbm [thread:$0]  %s188_s3, 256, %s411_s6, [#allocation3], %s305_s20, %s305_s20, %s306_s21  }
  0xef   :  { %s307_s26 = smov [#allocation4]  }
  0xf0   :  { %s199_s27 = sshll.u32 %s307_s26, 4  ;;  %s200_s27 = int_to_ptr.vmem [resolvable:$true] %s199_s27 }
  0xf1   :  { %s275_s28 = scalar_lea.vmem %s200_s27, 256  ;;  %p280_p9 = scmp.lt.s32.totalorder %s200_s27, %s200_s27 }
  0xf2   :  { %p276_p8 = scmp.ne.s32.totalorder %s200_s27, %s275_s28  ;;  %p281_p10 = scmp.lt.s32.totalorder %s275_s28, %s275_s28 }
  0xf4   :  { %p282_p11 = por %p281_p10, %p280_p9 }
  0xf6   :  { %p283_p12 = pnand %p282_p11, %p276_p8 }
 0x1b8   :  { %v173_v21 = vpop.f32.mrb[0].mxu1 }
 0x1b9   :  { %v174_v22 = vadd.f32 %v219_v20, %v173_v21  ;;  %v239_v23 = vpop.f32.mrb[1].mxu1 }
 0x1ba   :  { %v176_v24 = vpop.f32.mrb[2].mxu1 }
 0x1bb   :  { %180 = vst.msk [vmem:[#allocation4] sm:$0xff] %vm58_vm1, %v174_v22  ;;  %v177_v25 = vadd.f32 %v219_v20, %v176_v24  ;;  %v240_v26 = vpop.f32.mrb[3].mxu1 }
 0x1bd   :  { %181 = vst.msk [vmem:[#allocation4 + $0x8] sm:$0xff] %vm58_vm1, %v177_v25 }
 0x1be   :  { %286 = shalt.err (!%p283_p12)
}
 0x1bf   :  { %s287_s29 = scalar_lea.hbm %s412_s7, 256 }
 0x1c0   :  { %p288_p13 = scmp.ne.s32.totalorder %s412_s7, %s287_s29  ;;  %p291_p0 = scmp.lt.u32.totalorder %s287_s29, %s412_s7 }
 0x1c2   :  { %p293_p1 = pnand %p291_p0, %p288_p13 }
 0x1c4   :  { %296 = shalt.err (!%p293_p1)
}
 0x1c5   :  { %205 = dma.vmem_to_hbm [thread:$0]  %s200_s27, 256, %s412_s7, [#allocation5], %s305_s20, %s305_s20, %s306_s21  }
 0x1c6   :  { %297 = dma.done.wait [#allocation3], 256  }
 0x1c7   :  { %298 = vsyncadd [#allocation3], 4294967040 }
 0x1c8   :  { %299 = dma.done.wait [#allocation5], 256  }
 0x1c9   :  { %300 = vsyncadd [#allocation5], 4294967040 }
 0x1ca   :  { %212 = vsyncpa [#allocation3], 1 }
 0x1cb   :  { %213 = vsyncpa [#allocation5], 1 }

</bundles_post_ra>
